<compile_context>
chip_gen: v7x
topology: tpu7x:2x2x1
jax: 0.10.0
libtpu: 0.0.40
codegen_flags: <defaults>
</compile_context>

<pallas_src>
import jax
import jax.numpy as jnp
from jax import lax
from jax.experimental import pallas as pl
from jax.experimental.pallas import tpu as pltpu


def dqn_kernel(x_ref, w1_ref, b1_ref, w2_ref, b2_ref, w3_ref, b3_ref, o_ref):
    # Fully fused 3-layer MLP on one [tb, in_dim] batch tile (batch on sublanes).
    # x arrives as f32 straight from HBM; the bf16 cast happens here, not in the
    # wrapper (avoids an extra HBM pass over x).
    x = x_ref[...].astype(jnp.bfloat16)                                   # [tb, in]
    h1 = jnp.dot(x, w1_ref[...], preferred_element_type=jnp.float32) + b1_ref[...]
    h1 = jnp.maximum(h1, 0.0).astype(jnp.bfloat16)                        # [tb, 64]
    h2 = jnp.dot(h1, w2_ref[...], preferred_element_type=jnp.float32) + b2_ref[...]
    h2 = jnp.maximum(h2, 0.0).astype(jnp.bfloat16)                        # [tb, 32]
    o = jnp.dot(h2, w3_ref[...], preferred_element_type=jnp.float32) + b3_ref[...]
    o_ref[...] = o.astype(o_ref.dtype)                                    # [tb, 20]


def _round_up(n, m):
    return ((n + m - 1) // m) * m


def init_params(key, input_dim, output_dim=20):
    """nn.Linear-style init (U(+/- 1/sqrt(fan_in))), PyTorch [out, in] layout."""
    dims = [(input_dim, 64), (64, 32), (32, output_dim)]
    params = []
    for fan_in, fan_out in dims:
        key, kw, kb = jax.random.split(key, 3)
        bound = 1.0 / (fan_in ** 0.5)
        w = jax.random.uniform(kw, (fan_out, fan_in), jnp.float32, -bound, bound)
        b = jax.random.uniform(kb, (fan_out,), jnp.float32, -bound, bound)
        params.append((w, b))
    return tuple(params)


def prepare_params(params, compute_dtype=jnp.bfloat16):
    """One-time prep: transpose weights to [in, out] and cast to bf16.

    Weights/biases total ~2.5 KB, so they stay VMEM-resident across the whole
    grid.  Biases are kept f32 and reshaped to [1, out] for the in-kernel add.
    """
    (w1, b1), (w2, b2), (w3, b3) = params
    return (
        w1.T.astype(compute_dtype),          # [in, 64]
        b1.reshape(1, -1).astype(jnp.float32),
        w2.T.astype(compute_dtype),          # [64, 32]
        b2.reshape(1, -1).astype(jnp.float32),
        w3.T.astype(compute_dtype),          # [32, 20]
        b3.reshape(1, -1).astype(jnp.float32),
    )


def dqn_forward(x, prepared_params, *, tb=2048, out_dtype=jnp.float32):
    """x: [B, input_dim] f32  ->  [B, out_dim] (same semantics as the module).

    out_dtype=jnp.bfloat16 halves the dominant output HBM stream (useful on
    v5e/v6e); default f32 keeps full-precision Q-values.
    """
    w1, b1, w2, b2, w3, b3 = prepared_params
    B, in_dim = x.shape
    assert in_dim == w1.shape[0]
    out_dim = w3.shape[1]

    # Batch tile: sublane-aligned (multiple of 8), big enough to amortize the
    # per-grid-step overhead, never larger than the (rounded-up) batch; for
    # batches big enough to split, cap at ~B/2 so nt >= 2 and the "parallel"
    # axis can shard across the two TensorCores on v7x.
    tb = max(8, min(_round_up(tb, 8), _round_up(B, 8)))
    if B > 512:
        tb = min(tb, _round_up(pl.cdiv(B, 2), 8))
    nt = pl.cdiv(B, tb)

    x_spec = pl.BlockSpec((tb, in_dim), lambda i: (i, 0))
    const = lambda a: pl.BlockSpec(a.shape, lambda i: (0, 0))   # VMEM-resident

    flops = 2 * B * (in_dim * 64 + 64 * 32 + 32 * out_dim)
    weight_bytes = sum(int(a.size) * a.dtype.itemsize for a in prepared_params)
    bytes_accessed = (int(x.size) * x.dtype.itemsize
                      + B * out_dim * jnp.dtype(out_dtype).itemsize
                      + weight_bytes)

    return pl.pallas_call(
        dqn_kernel,
        out_shape=jax.ShapeDtypeStruct((B, out_dim), out_dtype),
        grid_spec=pltpu.PrefetchScalarGridSpec(
            num_scalar_prefetch=0,
            grid=(nt,),
            in_specs=[x_spec, const(w1), const(b1), const(w2), const(b2),
                      const(w3), const(b3)],
            out_specs=pl.BlockSpec((tb, out_dim), lambda i: (i, 0)),
        ),
        compiler_params=pltpu.CompilerParams(
            dimension_semantics=("parallel",)),
        cost_estimate=pl.CostEstimate(
            flops=flops, transcendentals=0, bytes_accessed=bytes_accessed),
    )(x, w1, b1, w2, b2, w3, b3)


def reference_forward(x, params, compute_dtype=jnp.bfloat16):
    """Pure-JAX reference with the same quantization points as the kernel."""
    (w1, b1), (w2, b2), (w3, b3) = params
    q = lambda a: a.astype(compute_dtype).astype(jnp.float32)
    hp = lax.Precision.HIGHEST
    h1 = jnp.maximum(jnp.dot(q(x), q(w1).T, precision=hp) + b1, 0.0)
    h2 = jnp.maximum(jnp.dot(q(h1), q(w2).T, precision=hp) + b2, 0.0)
    return jnp.dot(q(h2), q(w3).T, precision=hp) + b3


if __name__ == "__main__":
    key = jax.random.PRNGKey(0)
    k_x, k_x2, k_p = jax.random.split(key, 3)

    input_dim, output_dim = 8, 20  # small state dim; module hard-codes 20 actions
    params = init_params(k_p, input_dim, output_dim)
    prepared = prepare_params(params)

    # Small, module-scale case (single batch tile, no padding at all).
    x_small = jax.random.normal(k_x, (8, input_dim), dtype=jnp.float32)
    out_small = dqn_forward(x_small, prepared)
    jax.block_until_ready(out_small)
    ref_small = reference_forward(x_small, params)
    assert out_small.shape == (8, output_dim)
    assert jnp.allclose(out_small, ref_small, atol=2e-3, rtol=2e-3)

    # Larger, non-multiple batch: exercises the multi-tile parallel grid and
    # Pallas boundary-block masking on both the input read and output store.
    x_big = jax.random.normal(k_x2, (1000, input_dim), dtype=jnp.float32)
    out_big = dqn_forward(x_big, prepared, tb=264)
    jax.block_until_ready(out_big)
    ref_big = reference_forward(x_big, params)
    assert out_big.shape == (1000, output_dim)
    assert jnp.allclose(out_big, ref_big, atol=2e-3, rtol=2e-3)

    # bf16-output variant (smaller output HBM stream for v5e/v6e); looser
    # tolerance since Q-values lose ~3 decimal digits in the final cast.
    out_bf16 = dqn_forward(x_small, prepared, out_dtype=jnp.bfloat16)
    jax.block_until_ready(out_bf16)
    assert out_bf16.dtype == jnp.bfloat16
    assert jnp.allclose(out_bf16.astype(jnp.float32), ref_small, atol=0.03, rtol=0.03)

    print("KERNEL_OK")
</pallas_src>

<mosaic_0001>
module attributes {stable_mosaic.version = 11 : i64} {
  func.func @dqn_kernel(%arg0: i32, %arg1: memref<8x8xf32, #tpu.memory_space<vmem>>, %arg2: memref<8x64xbf16, #tpu.memory_space<vmem>>, %arg3: memref<1x64xf32, #tpu.memory_space<vmem>>, %arg4: memref<64x32xbf16, #tpu.memory_space<vmem>>, %arg5: memref<1x32xf32, #tpu.memory_space<vmem>>, %arg6: memref<32x20xbf16, #tpu.memory_space<vmem>>, %arg7: memref<1x20xf32, #tpu.memory_space<vmem>>, %arg8: memref<8x20xf32, #tpu.memory_space<vmem>>) attributes {dimension_semantics = [#tpu.dimension_semantics<parallel>], iteration_bounds = array<i64: 1>, scalar_prefetch = 0 : i64, scratch_operands = 0 : i64, tpu.core_type = #tpu.core_type<tc>, window_params = [{transform_indices = @transform_0, window_bounds = array<i64: 8, 8>}, {pipeline_mode = #tpu.pipeline_mode<synchronous>, transform_indices = @transform_1, window_bounds = array<i64: 8, 64>}, {pipeline_mode = #tpu.pipeline_mode<synchronous>, transform_indices = @transform_2, window_bounds = array<i64: 1, 64>}, {pipeline_mode = #tpu.pipeline_mode<synchronous>, transform_indices = @transform_3, window_bounds = array<i64: 64, 32>}, {pipeline_mode = #tpu.pipeline_mode<synchronous>, transform_indices = @transform_4, window_bounds = array<i64: 1, 32>}, {pipeline_mode = #tpu.pipeline_mode<synchronous>, transform_indices = @transform_5, window_bounds = array<i64: 32, 20>}, {pipeline_mode = #tpu.pipeline_mode<synchronous>, transform_indices = @transform_6, window_bounds = array<i64: 1, 20>}, {transform_indices = @transform_7, window_bounds = array<i64: 8, 20>}]} {
    %c0 = arith.constant 0 : index
    %c0_0 = arith.constant 0 : index
    %0 = vector.load %arg1[%c0, %c0_0] : memref<8x8xf32, #tpu.memory_space<vmem>>, vector<8x8xf32>
    %1 = arith.truncf %0 : vector<8x8xf32> to vector<8x8xbf16>
    %c0_1 = arith.constant 0 : index
    %c0_2 = arith.constant 0 : index
    %2 = vector.load %arg2[%c0_1, %c0_2] : memref<8x64xbf16, #tpu.memory_space<vmem>>, vector<8x64xbf16>
    %cst = arith.constant dense<0.000000e+00> : vector<8x64xf32>
    %3 = tpu.matmul %1, %2, %cst {dimension_numbers = #tpu.dot_dimension_numbers<[1], [0], [0], [1], [0, 0, 1, 1], [], []>} : vector<8x8xbf16>, vector<8x64xbf16>, vector<8x64xf32> -> vector<8x64xf32>
    %c0_3 = arith.constant 0 : index
    %c0_4 = arith.constant 0 : index
    %4 = vector.load %arg3[%c0_3, %c0_4] : memref<1x64xf32, #tpu.memory_space<vmem>>, vector<1x64xf32>
    %5 = vector.broadcast %4 : vector<1x64xf32> to vector<8x64xf32>
    %6 = arith.addf %3, %5 : vector<8x64xf32>
    %cst_5 = arith.constant 0.000000e+00 : f32
    %7 = vector.broadcast %cst_5 : f32 to vector<8x64xf32>
    %8 = arith.maximumf %6, %7 : vector<8x64xf32>
    %9 = arith.truncf %8 : vector<8x64xf32> to vector<8x64xbf16>
    %c0_6 = arith.constant 0 : index
    %c0_7 = arith.constant 0 : index
    %10 = vector.load %arg4[%c0_6, %c0_7] : memref<64x32xbf16, #tpu.memory_space<vmem>>, vector<64x32xbf16>
    %cst_8 = arith.constant dense<0.000000e+00> : vector<8x32xf32>
    %11 = tpu.matmul %9, %10, %cst_8 {dimension_numbers = #tpu.dot_dimension_numbers<[1], [0], [0], [1], [0, 0, 1, 1], [], []>} : vector<8x64xbf16>, vector<64x32xbf16>, vector<8x32xf32> -> vector<8x32xf32>
    %c0_9 = arith.constant 0 : index
    %c0_10 = arith.constant 0 : index
    %12 = vector.load %arg5[%c0_9, %c0_10] : memref<1x32xf32, #tpu.memory_space<vmem>>, vector<1x32xf32>
    %13 = vector.broadcast %12 : vector<1x32xf32> to vector<8x32xf32>
    %14 = arith.addf %11, %13 : vector<8x32xf32>
    %cst_11 = arith.constant 0.000000e+00 : f32
    %15 = vector.broadcast %cst_11 : f32 to vector<8x32xf32>
    %16 = arith.maximumf %14, %15 : vector<8x32xf32>
    %17 = arith.truncf %16 : vector<8x32xf32> to vector<8x32xbf16>
    %c0_12 = arith.constant 0 : index
    %c0_13 = arith.constant 0 : index
    %18 = vector.load %arg6[%c0_12, %c0_13] : memref<32x20xbf16, #tpu.memory_space<vmem>>, vector<32x20xbf16>
    %cst_14 = arith.constant dense<0.000000e+00> : vector<8x20xf32>
    %19 = tpu.matmul %17, %18, %cst_14 {dimension_numbers = #tpu.dot_dimension_numbers<[1], [0], [0], [1], [0, 0, 1, 1], [], []>} : vector<8x32xbf16>, vector<32x20xbf16>, vector<8x20xf32> -> vector<8x20xf32>
    %c0_15 = arith.constant 0 : index
    %c0_16 = arith.constant 0 : index
    %20 = vector.load %arg7[%c0_15, %c0_16] : memref<1x20xf32, #tpu.memory_space<vmem>>, vector<1x20xf32>
    %21 = vector.broadcast %20 : vector<1x20xf32> to vector<8x20xf32>
    %22 = arith.addf %19, %21 : vector<8x20xf32>
    %c0_17 = arith.constant 0 : index
    %c0_18 = arith.constant 0 : index
    %23 = vector.load %arg8[%c0_17, %c0_18] : memref<8x20xf32, #tpu.memory_space<vmem>>, vector<8x20xf32>
    tpu.vector_store %arg8[%c0_17, %c0_18], %22 {strides = array<i32>} : memref<8x20xf32, #tpu.memory_space<vmem>>, vector<8x20xf32>,
    return
  }
  func.func @transform_0(%arg0: i32) -> (i32, i32) {
    %c0_i32 = arith.constant 0 : i32
    %c0_i32_0 = arith.constant 0 : i32
    return %arg0, %c0_i32 : i32, i32
  }
  func.func @transform_1(%arg0: i32) -> (i32, i32) {
    %c0_i32 = arith.constant 0 : i32
    %c0_i32_0 = arith.constant 0 : i32
    %c0_i32_1 = arith.constant 0 : i32
    return %c0_i32, %c0_i32_0 : i32, i32
  }
  func.func @transform_2(%arg0: i32) -> (i32, i32) {
    %c0_i32 = arith.constant 0 : i32
    %c0_i32_0 = arith.constant 0 : i32
    %c0_i32_1 = arith.constant 0 : i32
    return %c0_i32, %c0_i32_0 : i32, i32
  }
  func.func @transform_3(%arg0: i32) -> (i32, i32) {
    %c0_i32 = arith.constant 0 : i32
    %c0_i32_0 = arith.constant 0 : i32
    %c0_i32_1 = arith.constant 0 : i32
    return %c0_i32, %c0_i32_0 : i32, i32
  }
  func.func @transform_4(%arg0: i32) -> (i32, i32) {
    %c0_i32 = arith.constant 0 : i32
    %c0_i32_0 = arith.constant 0 : i32
    %c0_i32_1 = arith.constant 0 : i32
    return %c0_i32, %c0_i32_0 : i32, i32
  }
  func.func @transform_5(%arg0: i32) -> (i32, i32) {
    %c0_i32 = arith.constant 0 : i32
    %c0_i32_0 = arith.constant 0 : i32
    %c0_i32_1 = arith.constant 0 : i32
    return %c0_i32, %c0_i32_0 : i32, i32
  }
  func.func @transform_6(%arg0: i32) -> (i32, i32) {
    %c0_i32 = arith.constant 0 : i32
    %c0_i32_0 = arith.constant 0 : i32
    %c0_i32_1 = arith.constant 0 : i32
    return %c0_i32, %c0_i32_0 : i32, i32
  }
  func.func @transform_7(%arg0: i32) -> (i32, i32) {
    %c0_i32 = arith.constant 0 : i32
    %c0_i32_0 = arith.constant 0 : i32
    return %arg0, %c0_i32 : i32, i32
  }
}

</mosaic_0001>

<bundles_post_ra>
// kernel: tpu_custom_call.1
= control target key start
LH: loop header
LB: loop body
LE: loop exit
PB: predicated region body
PF: predicated region fallthrough
CT: control target
= control target key end

     0   :  { %vm42_vm0 = vcmask 1043456   ;;  %v337_v2 = vmov 0.0   ;;  %vm338_vm1 = vmmov 0   ;;  %vm38_vm2 = vcmask 64512   ;;  %s425_s0 = inlined_call_operand.vmem [shape: f32[8,8], index: 0, kind: input, shape index: {}]   ;;  %s426_s1 = inlined_call_operand.vmem [shape: bf16[8,64], index: 1, kind: input, shape index: {}]   ;;  %s427_s2 = inlined_call_operand.vmem [shape: f32[1,64], index: 2, kind: input, shape index: {}]   ;;  %s428_s3 = inlined_call_operand.vmem [shape: bf16[64,32], index: 3, kind: input, shape index: {}]   ;;  %s429_s4 = inlined_call_operand.vmem [shape: f32[1,32], index: 4, kind: input, shape index: {}]   ;;  %s430_s5 = inlined_call_operand.vmem [shape: bf16[32,20], index: 5, kind: input, shape index: {}]   ;;  %s431_s6 = inlined_call_operand.vmem [shape: f32[1,20], index: 6, kind: input, shape index: {}]   ;;  %s432_s7 = inlined_call_operand.hbm [shape: f32[8,20], index: 7, kind: output, shape index: {}]  }
   0x1   :  { %v30_v0 = vld [vmem:[%s426_s1] sm:$0xf]  ;;  %278 = vmatprep.subr.bf16.mxu0 %v337_v2  ;;  %280 = vmatprep.mubr.msk.bf16.mxu0 %vm338_vm1, %v337_v2  ;;  %v308_v6 = vld [vmem:[%s428_s3 + $0x8] sm:$0xff]  }
   0x2   :  { %v28_v1 = vld [vmem:[%s425_s0] sm:$0xff]  ;;  %v44_v3 = vsel %vm42_vm0, %v30_v0, 0  ;;  %284 = vmatprep.subr.bf16.mxu1 %v337_v2  ;;  %292 = vmatprep.mubr.msk.bf16.mxu1 %vm338_vm1, %v337_v2 }
   0x3   :  { %v29_v4 = vpack.c.bf16 %v28_v1, %v28_v1  ;;  %279 = vmatpush3.bf16.msra.mxu0 %v44_v3  ;;  %v307_v5 = vld [vmem:[%s428_s3] sm:$0xff]  }
   0x4   :  { %296 = vmatprep.subr.bf16.mxu0 %v337_v2  ;;  %285 = vmatpush3.bf16.msra.mxu1 %v307_v5 }
   0x5   :  { %286 = vmatprep.subr.bf16.mxu1 %v337_v2 }
   0x6   :  { %281 = vmatmul.mubr.msk.bf16.vlgmr.msra.gmra.mrb[0].mxu0 %vm38_vm2, %v29_v4 }
   0x7   :  { %300 = vmatprep.mubr.msk.bf16.mxu0 %vm338_vm1, %v337_v2 }
   0x8   :  { %12 = vsyncpa [#allocation3], 0  ;;  %287 = vmatpush3.bf16.msra.mxu1 %v308_v6  ;;  %v309_v7 = vld [vmem:[%s428_s3 + $0x10] sm:$0xff]   ;;  %v310_v8 = vld [vmem:[%s428_s3 + $0x18] sm:$0xff]   ;;  %vm127_vm3 = vcmask 523264   ;;  %vm196_vm4 = vcmask 261120  }
   0x9   :  { %288 = vmatprep.subr.bf16.mxu1 %v337_v2  ;;  %v311_v9 = vld [vmem:[%s430_s5] sm:$0xff]   ;;  %v312_v18 = vld [vmem:[%s430_s5 + $0x8] sm:$0xff]   ;;  %s339_s19 = smov [#allocation2]   ;;  %vm240_vm5 = vcmask 162816  }
   0xa   :  { %297 = vmatpush3.bf16.msra.mxu0 %v311_v9  ;;  %v256_v10 = vld [vmem:[%s427_s2] ss:$0 sm:$0xff]  ;;  %s248_s5 = sshll.u32 %s339_s19, 4  ;;  %s249_s5 = int_to_ptr.vmem [resolvable:$true] %s248_s5 }
   0xb   :  { %298 = vmatprep.subr.bf16.mxu0 %v337_v2  ;;  %v258_v19 = vld [vmem:[%s429_s4] ss:$0 sm:$0xff]  ;;  %s313_s4 = scalar_lea.vmem %s249_s5, 128  ;;  %p318_p1 = scmp.lt.s32.totalorder %s249_s5, %s249_s5 }
   0xc   :  { %289 = vmatpush3.bf16.msra.mxu1 %v309_v7  ;;  %v264_v27 = vld [vmem:[%s431_s6] ss:$0 sm:$0xff]  ;;  %p314_p0 = scmp.ne.s32.totalorder %s249_s5, %s313_s4  ;;  %p319_p2 = scmp.lt.s32.totalorder %s313_s4, %s313_s4 }
   0xd   :  { %290 = vmatprep.subr.bf16.mxu1 %v337_v2 }
   0xe   :  { %299 = vmatpush3.bf16.msra.mxu0 %v312_v18  ;;  %p320_p3 = por %p319_p2, %p318_p1 }
  0x10   :  { %291 = vmatpush3.bf16.msra.mxu1 %v310_v8  ;;  %p321_p4 = pnand %p320_p3, %p314_p0 }
  0xd9   :  { %v80_v11 = vpop.f32.mrb[0].mxu0 }
  0xda   :  { %v81_v12 = vadd.f32 %v256_v10, %v80_v11  ;;  %v282_v13 = vpop.f32.mrb[1].mxu0 }
  0xdb   :  { %v83_v14 = vpop.f32.mrb[2].mxu0 }
  0xdc   :  { %v86_v15 = vmax.f32 %v81_v12, 0.0  ;;  %v283_v16 = vpop.f32.mrb[3].mxu0 }
  0xde   :  { %v87_v17 = vpack.c.bf16 %v86_v15, %v86_v15 }
  0xe0   :  { %293 = vmatmul.mubr.msk.bf16.vlgmr.msra.gmra.mrb[0].mxu1 %vm127_vm3, %v87_v17 }
 0x1b3   :  { %v165_v20 = vpop.f32.mrb[0].mxu1 }
 0x1b4   :  { %v166_v21 = vadd.f32 %v258_v19, %v165_v20  ;;  %v294_v22 = vpop.f32.mrb[1].mxu1 }
 0x1b5   :  { %v168_v23 = vpop.f32.mrb[2].mxu1 }
 0x1b6   :  { %v171_v24 = vmax.f32 %v166_v21, 0.0  ;;  %v295_v25 = vpop.f32.mrb[3].mxu1 }
 0x1b8   :  { %v172_v26 = vpack.c.bf16 %v171_v24, %v171_v24 }
 0x1ba   :  { %301 = vmatmul.mubr.msk.bf16.vlgmr.msra.gmra.mrb[4].mxu0 %vm196_vm4, %v172_v26 }
 0x28d   :  { %v234_v28 = vpop.f32.mrb[4].mxu0 }
 0x28e   :  { %v235_v29 = vadd.f32 %v264_v27, %v234_v28  ;;  %v302_v30 = vpop.f32.mrb[5].mxu0 }
 0x28f   :  { %v237_v31 = vpop.f32.mrb[6].mxu0 }
 0x290   :  { %v303_v32 = vpop.f32.mrb[7].mxu0  ;;  %241 = vst.msk [vmem:[#allocation2] sm:$0xff] %vm240_vm5, %v235_v29 }
 0x291   :  { %324 = shalt.err (!%p321_p4)
}
 0x292   :  { %s325_s6 = scalar_lea.hbm %s432_s7, 128 }
 0x293   :  { %p326_p5 = scmp.ne.s32.totalorder %s432_s7, %s325_s6  ;;  %p329_p6 = scmp.lt.u32.totalorder %s325_s6, %s432_s7 }
 0x295   :  { %p331_p7 = pnand %p329_p6, %p326_p5 }
 0x297   :  { %334 = shalt.err (!%p331_p7)
}
 0x298   :  { %251 = dma.vmem_to_hbm [thread:$0]  %s249_s5, 128, %s432_s7, [#allocation3]  }
 0x299   :  { %335 = dma.done.wait [#allocation3], 128  }
 0x29a   :  { %336 = vsyncadd [#allocation3], 4294967168 }
 0x29b   :  { %255 = vsyncpa [#allocation3], 1 }

</bundles_post_ra>
